<compile_context>
chip_gen: v5e
topology: v5e:2x2
jax: 0.10.0
libtpu: 0.0.40
codegen_flags: <defaults>
</compile_context>

<pallas_src>
import functools

import jax
import jax.numpy as jnp
from jax.experimental import pallas as pl
from jax.experimental.pallas import tpu as pltpu


def _dyconv_kernel(x_ref, halo_ref, cab_ref, wdw_ref, w1a_ref, out_ref,
                   xs_ref, tap_ref, *, th, w, c, a):
    """One (batch, row-block) grid step.

    x_ref   : (C, TH*W)    the TH block rows, flat row-major (lane-dense).
    halo_ref: (C, 2*W)     row above | row below the block (zeros at image border).
    cab_ref : (C, 1)       dw bias + channel-attention (GAP->conv1d) value, per batch.
    wdw_ref : (9, C, 1)    depthwise 3x3 weights, tap-major (tap = kh*3 + kw).
    w1a_ref : (9C, C+1)    AFG 1x1 weights with bias folded as the last column (bf16).
    out_ref : (C, TH*W)    lane-dense output block.
    xs_ref  : (C, SW)      scratch: halo'd (TH+2)-row window + 1-lane safety aprons.
    tap_ref : (9, C, TH*W) scratch: the 9 shifted tap slabs, materialized once.
    """
    n = th * w
    sw = xs_ref.shape[1]
    f32 = jnp.float32

    # ---- stitch the halo'd (TH+2)-row window into one flat VMEM slab -----------------
    # Aprons are zeroed every step (only lanes a-1 and a+(TH+2)*W are ever read, by the
    # column-masked corner taps), so there is no cross-step state -> safe under any
    # megacore grid split.
    xs_ref[:, 0:a] = jnp.zeros((c, a), f32)                               # left apron
    xs_ref[:, a + (th + 2) * w:sw] = jnp.zeros((c, sw - (a + (th + 2) * w)), f32)
    xs_ref[:, a:a + w] = halo_ref[:, 0:w]                                 # row above block
    xs_ref[:, a + w:a + w + n] = x_ref[...]                               # TH rows (aligned)
    xs_ref[:, a + (th + 1) * w:a + (th + 2) * w] = halo_ref[:, w:2 * w]   # row below block

    # ---- materialize each of the 9 shifted tap slabs exactly once --------------------
    for t in range(9):
        kh, kw = divmod(t, 3)
        s0 = a + kh * w + (kw - 1)            # unaligned lane offset into the flat slab
        tap_ref[t] = xs_ref[:, s0:s0 + n]

    # ---- in-kernel column-validity masks (no DMA'd mask input) -----------------------
    col = jax.lax.broadcasted_iota(jnp.int32, (1, n), 1) % w
    ml = (col >= 1).astype(f32)               # pixel has a valid left  neighbour (kw=0)
    mr = (col < (w - 1)).astype(f32)          # pixel has a valid right neighbour (kw=2)

    def conv9(coef):
        """sum_t tap_t * coef(t), grouped by kw: one mask multiply per kw group."""
        groups = []
        for kw in range(3):
            g = tap_ref[kw] * coef(kw)
            for kh in (1, 2):
                t = kh * 3 + kw
                g = g + tap_ref[t] * coef(t)
            groups.append(g)
        return groups[1] + ml * groups[0] + mr * groups[2]

    # ---- SEKG: depthwise 3x3 + (precomputed channel attention + biases) --------------
    feat = conv9(lambda t: wdw_ref[t]) + cab_ref[...]                     # (C, n) f32

    # ---- AFG: single merged (9C, C+1) @ (C+1, n) bf16 matmul (bias via ones row) -----
    feat_aug = jnp.concatenate([feat, jnp.ones((1, n), f32)], axis=0).astype(jnp.bfloat16)
    f_all = jnp.dot(w1a_ref[...], feat_aug,
                    preferred_element_type=jnp.float32)                   # (9C, n) f32

    # ---- DyConv: per-pixel 3x3 filters applied to the cached taps --------------------
    out_ref[...] = conv9(lambda t: f_all[t * c:(t + 1) * c, :])           # single store


def _pick_block_rows(h, w, target_lanes=2048):
    """Smallest divisor TH of H with TH*W a multiple of 128 and >= target lanes."""
    cands = [d for d in range(1, h + 1) if h % d == 0 and (d * w) % 128 == 0]
    if not cands:
        return h                      # fallback: whole image (masked store, still correct)
    for d in cands:
        if d * w >= target_lanes:
            return d
    return cands[-1]


def dyconv_forward(x_nchw, params, block_rows=None):
    """x_nchw: (B, C, H, W) float32. Returns (B, C, H, W) float32."""
    bsz, c, h, w = x_nchw.shape
    hw = h * w
    x_nchw = x_nchw.astype(jnp.float32)

    th = _pick_block_rows(h, w) if block_rows is None else int(block_rows)
    assert h % th == 0, f"block_rows={th} must divide H={h}"
    nj = h // th
    n = th * w

    # Apron so the corner taps (offset -1 / +1 past the halo'd window) never read OOB;
    # chosen so the big block store lands 128-lane aligned.
    a = (-w) % 128
    if a == 0:
        a = 128
    sw = -(-(a + (th + 2) * w + 1) // 128) * 128

    # ---- channel attention (GAP -> conv1d over channels) + folded biases -------------
    # Global reduction -> computed once per batch here (the row-tiled grid never sees
    # the full image); exactly linear-equivalent to the former in-kernel band matmul.
    m = jnp.mean(x_nchw, axis=(2, 3))                                     # (B, C)
    wca = params["ca_w"].reshape(3).astype(jnp.float32)
    mpad = jnp.pad(m, ((0, 0), (1, 1)))
    ca = (wca[0] * mpad[:, 0:c] + wca[1] * mpad[:, 1:c + 1]
          + wca[2] * mpad[:, 2:c + 2] + params["ca_b"].reshape(1))
    cab = (ca + params["dw_b"].reshape(1, c)).reshape(bsz, c, 1).astype(jnp.float32)

    # ---- tiny halo stream: 2 rows per row block (replaces the full-image pad pass) ---
    zrow = jnp.zeros((bsz, c, 1, w), jnp.float32)
    top_rows = x_nchw[:, :, th - 1:h - th:th, :]          # row j*TH-1   for j = 1..NJ-1
    bot_rows = x_nchw[:, :, th:h:th, :]                   # row (j+1)*TH for j = 0..NJ-2
    top = jnp.concatenate([zrow, top_rows], axis=2)       # (B, C, NJ, W)
    bot = jnp.concatenate([bot_rows, zrow], axis=2)       # (B, C, NJ, W)
    halo = jnp.stack([top, bot], axis=3)                  # (B, C, NJ, 2, W)
    halo = halo.transpose(0, 2, 1, 3, 4).reshape(bsz, nj, c, 2 * w)

    # ---- batch-invariant parameter re-layout (runs once) -----------------------------
    wdw = params["dw_w"].reshape(c, 9).T.reshape(9, c, 1).astype(jnp.float32)
    w1 = (params["pw_w"].reshape(9 * c, c)                # torch row o = c_out*9 + tap
          .reshape(c, 9, c).transpose(1, 0, 2).reshape(9 * c, c))   # row = tap*C + c_out
    b1 = params["pw_b"].reshape(c, 9).T.reshape(9 * c, 1)
    w1a = jnp.concatenate([w1, b1], axis=1).astype(jnp.bfloat16)    # (9C, C+1)

    x_flat = x_nchw.reshape(bsz, c, hw)                   # free trailing-dim reshape

    kernel = functools.partial(_dyconv_kernel, th=th, w=w, c=c, a=a)
    out_flat = pl.pallas_call(
        kernel,
        out_shape=jax.ShapeDtypeStruct((bsz, c, hw), jnp.float32),
        grid=(bsz, nj),
        in_specs=[
            pl.BlockSpec((None, c, n), lambda bi, j: (bi, 0, j)),          # row block
            pl.BlockSpec((None, None, c, 2 * w), lambda bi, j: (bi, j, 0, 0)),  # halo rows
            pl.BlockSpec((None, c, 1), lambda bi, j: (bi, 0, 0)),          # per-batch cab
            pl.BlockSpec((9, c, 1), lambda bi, j: (0, 0, 0)),              # depthwise weights
            pl.BlockSpec((9 * c, c + 1), lambda bi, j: (0, 0)),            # AFG weights+bias
        ],
        out_specs=pl.BlockSpec((None, c, n), lambda bi, j: (bi, 0, j)),
        scratch_shapes=[
            pltpu.VMEM((c, sw), jnp.float32),                              # stitched window
            pltpu.VMEM((9, c, n), jnp.float32),                            # tap cache
        ],
        compiler_params=pltpu.CompilerParams(
            dimension_semantics=("parallel", "parallel"),
            vmem_limit_bytes=48 * 1024 * 1024,
        ),
    )(x_flat, halo, cab, wdw, w1a)
    return out_flat.reshape(bsz, c, h, w)


def dyconv_ref(x, params):
    """Pure-JAX reference with PyTorch semantics (NCHW), for verification."""
    b, c, h, w = x.shape
    sa = jax.lax.conv_general_dilated(
        x, params["dw_w"], window_strides=(1, 1), padding=((1, 1), (1, 1)),
        dimension_numbers=("NCHW", "OIHW", "NCHW"), feature_group_count=c,
        precision=jax.lax.Precision.HIGHEST,
    ) + params["dw_b"].reshape(1, c, 1, 1)
    y = jnp.mean(x, axis=(2, 3))                                  # (B, C)
    ypad = jnp.pad(y, ((0, 0), (1, 1)))
    wca = params["ca_w"].reshape(3)
    ca = (wca[0] * ypad[:, 0:c] + wca[1] * ypad[:, 1:c + 1]
          + wca[2] * ypad[:, 2:c + 2] + params["ca_b"].reshape(1))
    feat = sa + ca.reshape(b, c, 1, 1)
    Wp = params["pw_w"].reshape(9 * c, c)
    f = jnp.einsum("oc,bchw->bohw", Wp, feat,
                   precision=jax.lax.Precision.HIGHEST) + params["pw_b"].reshape(1, 9 * c, 1, 1)
    filt = f.reshape(b, c, 9, h, w)
    xpad = jnp.pad(x, ((0, 0), (0, 0), (1, 1), (1, 1)))
    patches = jnp.stack([xpad[:, :, kh:kh + h, kw:kw + w]
                         for kh in range(3) for kw in range(3)], axis=2)
    return jnp.sum(patches * filt, axis=2)


if __name__ == "__main__":
    B, C, H, W = 2, 8, 16, 16
    key = jax.random.PRNGKey(0)
    ks = jax.random.split(key, 7)
    params = {
        "dw_w": 0.1 * jax.random.normal(ks[0], (C, 1, 3, 3), jnp.float32),
        "dw_b": 0.1 * jax.random.normal(ks[1], (C,), jnp.float32),
        "ca_w": 0.1 * jax.random.normal(ks[2], (1, 1, 3), jnp.float32),
        "ca_b": 0.1 * jax.random.normal(ks[3], (1,), jnp.float32),
        "pw_w": 0.1 * jax.random.normal(ks[4], (C * 9, C, 1, 1), jnp.float32),
        "pw_b": 0.1 * jax.random.normal(ks[5], (C * 9,), jnp.float32),
    }
    x = jax.random.normal(ks[6], (B, C, H, W), jnp.float32)

    ref = jax.block_until_ready(dyconv_ref(x, params))

    # Multi-row-block path (exercises the halo stitch): TH=8 -> grid (B, 2).
    out_tiled = jax.block_until_ready(dyconv_forward(x, params, block_rows=8))
    # Auto-picked single-block path (TH=H) as well.
    out_auto = jax.block_until_ready(dyconv_forward(x, params))

    assert out_tiled.shape == (B, C, H, W), out_tiled.shape
    err_tiled = float(jnp.max(jnp.abs(out_tiled - ref)))
    err_auto = float(jnp.max(jnp.abs(out_auto - ref)))
    # bf16 MXU operands in the merged AFG matmul -> tolerance 1e-2 (as before).
    assert err_tiled < 1e-2, f"tiled path max abs error too large: {err_tiled}"
    assert err_auto < 1e-2, f"auto path max abs error too large: {err_auto}"
    print("KERNEL_OK")
</pallas_src>

<mosaic_0001>
module attributes {stable_mosaic.version = 11 : i64} {
  func.func @_dyconv_kernel(%arg0: i32, %arg1: i32, %arg2: memref<1x8x128xf32, #tpu.memory_space<vmem>>, %arg3: memref<1x1x8x32xf32, #tpu.memory_space<vmem>>, %arg4: memref<1x8x1xf32, #tpu.memory_space<vmem>>, %arg5: memref<9x8x1xf32, #tpu.memory_space<vmem>>, %arg6: memref<72x9xbf16, #tpu.memory_space<vmem>>, %arg7: memref<1x8x128xf32, #tpu.memory_space<vmem>>, %arg8: memref<8x384xf32, #tpu.memory_space<vmem>>, %arg9: memref<9x8x128xf32, #tpu.memory_space<vmem>>) attributes {dimension_semantics = [#tpu.dimension_semantics<parallel>, #tpu.dimension_semantics<parallel>], iteration_bounds = array<i64: 2, 2>, scalar_prefetch = 0 : i64, scratch_operands = 2 : i64, tpu.core_type = #tpu.core_type<tc>, window_params = [{transform_indices = @transform_0, window_bounds = array<i64: 1, 8, 128>}, {transform_indices = @transform_1, window_bounds = array<i64: 1, 1, 8, 32>}, {transform_indices = @transform_2, window_bounds = array<i64: 1, 8, 1>}, {pipeline_mode = #tpu.pipeline_mode<synchronous>, transform_indices = @transform_3, window_bounds = array<i64: 9, 8, 1>}, {pipeline_mode = #tpu.pipeline_mode<synchronous>, transform_indices = @transform_4, window_bounds = array<i64: 72, 9>}, {transform_indices = @transform_5, window_bounds = array<i64: 1, 8, 128>}]} {
    %cst = arith.constant 0.000000e+00 : f32
    %0 = vector.broadcast %cst : f32 to vector<8x112xf32>
    %c0 = arith.constant 0 : index
    %c0_0 = arith.constant 0 : index
    %1 = vector.load %arg8[%c0, %c0_0] : memref<8x384xf32, #tpu.memory_space<vmem>>, vector<8x112xf32>
    tpu.vector_store %arg8[%c0, %c0_0], %0 {strides = array<i32>} : memref<8x384xf32, #tpu.memory_space<vmem>>, vector<8x112xf32>,
    %cst_1 = arith.constant 0.000000e+00 : f32
    %2 = vector.broadcast %cst_1 : f32 to vector<8x112xf32>
    %c0_2 = arith.constant 0 : index
    %c272 = arith.constant 272 : index
    %3 = vector.load %arg8[%c0_2, %c272] : memref<8x384xf32, #tpu.memory_space<vmem>>, vector<8x112xf32>
    tpu.vector_store %arg8[%c0_2, %c272], %2 {strides = array<i32>} : memref<8x384xf32, #tpu.memory_space<vmem>>, vector<8x112xf32>,
    %c0_3 = arith.constant 0 : index
    %c0_4 = arith.constant 0 : index
    %c0_5 = arith.constant 0 : index
    %c0_6 = arith.constant 0 : index
    %4 = vector.load %arg3[%c0_3, %c0_4, %c0_5, %c0_6] : memref<1x1x8x32xf32, #tpu.memory_space<vmem>>, vector<1x1x8x16xf32>
    %5 = vector.shape_cast %4 : vector<1x1x8x16xf32> to vector<8x16xf32>
    %c0_7 = arith.constant 0 : index
    %c112 = arith.constant 112 : index
    %6 = vector.load %arg8[%c0_7, %c112] : memref<8x384xf32, #tpu.memory_space<vmem>>, vector<8x16xf32>
    tpu.vector_store %arg8[%c0_7, %c112], %5 {strides = array<i32>} : memref<8x384xf32, #tpu.memory_space<vmem>>, vector<8x16xf32>,
    %c0_8 = arith.constant 0 : index
    %c0_9 = arith.constant 0 : index
    %c0_10 = arith.constant 0 : index
    %7 = vector.load %arg2[%c0_8, %c0_9, %c0_10] : memref<1x8x128xf32, #tpu.memory_space<vmem>>, vector<1x8x128xf32>
    %8 = vector.shape_cast %7 : vector<1x8x128xf32> to vector<8x128xf32>
    %c0_11 = arith.constant 0 : index
    %c128 = arith.constant 128 : index
    %9 = vector.load %arg8[%c0_11, %c128] : memref<8x384xf32, #tpu.memory_space<vmem>>, vector<8x128xf32>
    tpu.vector_store %arg8[%c0_11, %c128], %8 {strides = array<i32>} : memref<8x384xf32, #tpu.memory_space<vmem>>, vector<8x128xf32>,
    %c0_12 = arith.constant 0 : index
    %c0_13 = arith.constant 0 : index
    %c0_14 = arith.constant 0 : index
    %c16 = arith.constant 16 : index
    %10 = vector.load %arg3[%c0_12, %c0_13, %c0_14, %c16] : memref<1x1x8x32xf32, #tpu.memory_space<vmem>>, vector<1x1x8x16xf32>
    %11 = vector.shape_cast %10 : vector<1x1x8x16xf32> to vector<8x16xf32>
    %c0_15 = arith.constant 0 : index
    %c256 = arith.constant 256 : index
    %12 = vector.load %arg8[%c0_15, %c256] : memref<8x384xf32, #tpu.memory_space<vmem>>, vector<8x16xf32>
    tpu.vector_store %arg8[%c0_15, %c256], %11 {strides = array<i32>} : memref<8x384xf32, #tpu.memory_space<vmem>>, vector<8x16xf32>,
    %c0_16 = arith.constant 0 : index
    %c111 = arith.constant 111 : index
    %13 = vector.load %arg8[%c0_16, %c111] : memref<8x384xf32, #tpu.memory_space<vmem>>, vector<8x128xf32>
    %c0_17 = arith.constant 0 : index
    %c0_18 = arith.constant 0 : index
    %c0_19 = arith.constant 0 : index
    %14 = vector.load %arg9[%c0_17, %c0_18, %c0_19] : memref<9x8x128xf32, #tpu.memory_space<vmem>>, vector<1x8x128xf32>
    %15 = vector.shape_cast %14 : vector<1x8x128xf32> to vector<8x128xf32>
    %16 = vector.shape_cast %13 : vector<8x128xf32> to vector<1x8x128xf32>
    tpu.vector_store %arg9[%c0_17, %c0_18, %c0_19], %16 {strides = array<i32>} : memref<9x8x128xf32, #tpu.memory_space<vmem>>, vector<1x8x128xf32>,
    %c0_20 = arith.constant 0 : index
    %c112_21 = arith.constant 112 : index
    %17 = vector.load %arg8[%c0_20, %c112_21] : memref<8x384xf32, #tpu.memory_space<vmem>>, vector<8x128xf32>
    %c1 = arith.constant 1 : index
    %c0_22 = arith.constant 0 : index
    %c0_23 = arith.constant 0 : index
    %18 = vector.load %arg9[%c1, %c0_22, %c0_23] : memref<9x8x128xf32, #tpu.memory_space<vmem>>, vector<1x8x128xf32>
    %19 = vector.shape_cast %18 : vector<1x8x128xf32> to vector<8x128xf32>
    %20 = vector.shape_cast %17 : vector<8x128xf32> to vector<1x8x128xf32>
    tpu.vector_store %arg9[%c1, %c0_22, %c0_23], %20 {strides = array<i32>} : memref<9x8x128xf32, #tpu.memory_space<vmem>>, vector<1x8x128xf32>,
    %c0_24 = arith.constant 0 : index
    %c113 = arith.constant 113 : index
    %21 = vector.load %arg8[%c0_24, %c113] : memref<8x384xf32, #tpu.memory_space<vmem>>, vector<8x128xf32>
    %c2 = arith.constant 2 : index
    %c0_25 = arith.constant 0 : index
    %c0_26 = arith.constant 0 : index
    %22 = vector.load %arg9[%c2, %c0_25, %c0_26] : memref<9x8x128xf32, #tpu.memory_space<vmem>>, vector<1x8x128xf32>
    %23 = vector.shape_cast %22 : vector<1x8x128xf32> to vector<8x128xf32>
    %24 = vector.shape_cast %21 : vector<8x128xf32> to vector<1x8x128xf32>
    tpu.vector_store %arg9[%c2, %c0_25, %c0_26], %24 {strides = array<i32>} : memref<9x8x128xf32, #tpu.memory_space<vmem>>, vector<1x8x128xf32>,
    %c0_27 = arith.constant 0 : index
    %c127 = arith.constant 127 : index
    %25 = vector.load %arg8[%c0_27, %c127] : memref<8x384xf32, #tpu.memory_space<vmem>>, vector<8x128xf32>
    %c3 = arith.constant 3 : index
    %c0_28 = arith.constant 0 : index
    %c0_29 = arith.constant 0 : index
    %26 = vector.load %arg9[%c3, %c0_28, %c0_29] : memref<9x8x128xf32, #tpu.memory_space<vmem>>, vector<1x8x128xf32>
    %27 = vector.shape_cast %26 : vector<1x8x128xf32> to vector<8x128xf32>
    %28 = vector.shape_cast %25 : vector<8x128xf32> to vector<1x8x128xf32>
    tpu.vector_store %arg9[%c3, %c0_28, %c0_29], %28 {strides = array<i32>} : memref<9x8x128xf32, #tpu.memory_space<vmem>>, vector<1x8x128xf32>,
    %c0_30 = arith.constant 0 : index
    %c128_31 = arith.constant 128 : index
    %29 = vector.load %arg8[%c0_30, %c128_31] : memref<8x384xf32, #tpu.memory_space<vmem>>, vector<8x128xf32>
    %c4 = arith.constant 4 : index
    %c0_32 = arith.constant 0 : index
    %c0_33 = arith.constant 0 : index
    %30 = vector.load %arg9[%c4, %c0_32, %c0_33] : memref<9x8x128xf32, #tpu.memory_space<vmem>>, vector<1x8x128xf32>
    %31 = vector.shape_cast %30 : vector<1x8x128xf32> to vector<8x128xf32>
    %32 = vector.shape_cast %29 : vector<8x128xf32> to vector<1x8x128xf32>
    tpu.vector_store %arg9[%c4, %c0_32, %c0_33], %32 {strides = array<i32>} : memref<9x8x128xf32, #tpu.memory_space<vmem>>, vector<1x8x128xf32>,
    %c0_34 = arith.constant 0 : index
    %c129 = arith.constant 129 : index
    %33 = vector.load %arg8[%c0_34, %c129] : memref<8x384xf32, #tpu.memory_space<vmem>>, vector<8x128xf32>
    %c5 = arith.constant 5 : index
    %c0_35 = arith.constant 0 : index
    %c0_36 = arith.constant 0 : index
    %34 = vector.load %arg9[%c5, %c0_35, %c0_36] : memref<9x8x128xf32, #tpu.memory_space<vmem>>, vector<1x8x128xf32>
    %35 = vector.shape_cast %34 : vector<1x8x128xf32> to vector<8x128xf32>
    %36 = vector.shape_cast %33 : vector<8x128xf32> to vector<1x8x128xf32>
    tpu.vector_store %arg9[%c5, %c0_35, %c0_36], %36 {strides = array<i32>} : memref<9x8x128xf32, #tpu.memory_space<vmem>>, vector<1x8x128xf32>,
    %c0_37 = arith.constant 0 : index
    %c143 = arith.constant 143 : index
    %37 = vector.load %arg8[%c0_37, %c143] : memref<8x384xf32, #tpu.memory_space<vmem>>, vector<8x128xf32>
    %c6 = arith.constant 6 : index
    %c0_38 = arith.constant 0 : index
    %c0_39 = arith.constant 0 : index
    %38 = vector.load %arg9[%c6, %c0_38, %c0_39] : memref<9x8x128xf32, #tpu.memory_space<vmem>>, vector<1x8x128xf32>
    %39 = vector.shape_cast %38 : vector<1x8x128xf32> to vector<8x128xf32>
    %40 = vector.shape_cast %37 : vector<8x128xf32> to vector<1x8x128xf32>
    tpu.vector_store %arg9[%c6, %c0_38, %c0_39], %40 {strides = array<i32>} : memref<9x8x128xf32, #tpu.memory_space<vmem>>, vector<1x8x128xf32>,
    %c0_40 = arith.constant 0 : index
    %c144 = arith.constant 144 : index
    %41 = vector.load %arg8[%c0_40, %c144] : memref<8x384xf32, #tpu.memory_space<vmem>>, vector<8x128xf32>
    %c7 = arith.constant 7 : index
    %c0_41 = arith.constant 0 : index
    %c0_42 = arith.constant 0 : index
    %42 = vector.load %arg9[%c7, %c0_41, %c0_42] : memref<9x8x128xf32, #tpu.memory_space<vmem>>, vector<1x8x128xf32>
    %43 = vector.shape_cast %42 : vector<1x8x128xf32> to vector<8x128xf32>
    %44 = vector.shape_cast %41 : vector<8x128xf32> to vector<1x8x128xf32>
    tpu.vector_store %arg9[%c7, %c0_41, %c0_42], %44 {strides = array<i32>} : memref<9x8x128xf32, #tpu.memory_space<vmem>>, vector<1x8x128xf32>,
    %c0_43 = arith.constant 0 : index
    %c145 = arith.constant 145 : index
    %45 = vector.load %arg8[%c0_43, %c145] : memref<8x384xf32, #tpu.memory_space<vmem>>, vector<8x128xf32>
    %c8 = arith.constant 8 : index
    %c0_44 = arith.constant 0 : index
    %c0_45 = arith.constant 0 : index
    %46 = vector.load %arg9[%c8, %c0_44, %c0_45] : memref<9x8x128xf32, #tpu.memory_space<vmem>>, vector<1x8x128xf32>
    %47 = vector.shape_cast %46 : vector<1x8x128xf32> to vector<8x128xf32>
    %48 = vector.shape_cast %45 : vector<8x128xf32> to vector<1x8x128xf32>
    tpu.vector_store %arg9[%c8, %c0_44, %c0_45], %48 {strides = array<i32>} : memref<9x8x128xf32, #tpu.memory_space<vmem>>, vector<1x8x128xf32>,
    %49 = tpu.iota {dimensions = array<i32: 1>} : vector<1x128xi32>
    %c16_i32 = arith.constant 16 : i32
    %c0_i32 = arith.constant 0 : i32
    %50 = arith.cmpi eq, %c16_i32, %c0_i32 : i32
    %c1_i32 = arith.constant 1 : i32
    %51 = arith.select %50, %c1_i32, %c16_i32 : i32
    %52 = vector.broadcast %51 : i32 to vector<1x128xi32>
    %53 = arith.remsi %49, %52 : vector<1x128xi32>
    %c0_i32_46 = arith.constant 0 : i32
    %54 = vector.broadcast %c0_i32_46 : i32 to vector<1x128xi32>
    %55 = arith.cmpi ne, %53, %54 : vector<1x128xi32>
    %c0_i32_47 = arith.constant 0 : i32
    %56 = vector.broadcast %c0_i32_47 : i32 to vector<1x128xi32>
    %57 = arith.cmpi slt, %53, %56 : vector<1x128xi32>
    %c0_i32_48 = arith.constant 0 : i32
    %58 = arith.cmpi slt, %51, %c0_i32_48 : i32
    %59 = vector.broadcast %58 : i1 to vector<1x128xi1>
    %60 = vector.broadcast %59 : vector<1x128xi1> to vector<1x128xi1>
    %61 = arith.xori %57, %60 : vector<1x128xi1>
    %62 = arith.andi %61, %55 : vector<1x128xi1>
    %63 = vector.broadcast %51 : i32 to vector<1x128xi32>
    %64 = arith.addi %53, %63 : vector<1x128xi32>
    %65 = arith.select %62, %64, %53 : vector<1x128xi1>, vector<1x128xi32>
    %c1_i32_49 = arith.constant 1 : i32
    %66 = vector.broadcast %c1_i32_49 : i32 to vector<1x128xi32>
    %67 = arith.cmpi sge, %65, %66 : vector<1x128xi32>
    %68 = arith.extui %67 : vector<1x128xi1> to vector<1x128xi32>
    %69 = arith.sitofp %68 : vector<1x128xi32> to vector<1x128xf32>
    %c15_i32 = arith.constant 15 : i32
    %70 = vector.broadcast %c15_i32 : i32 to vector<1x128xi32>
    %71 = arith.cmpi slt, %65, %70 : vector<1x128xi32>
    %72 = arith.extui %71 : vector<1x128xi1> to vector<1x128xi32>
    %73 = arith.sitofp %72 : vector<1x128xi32> to vector<1x128xf32>
    %c0_50 = arith.constant 0 : index
    %c0_51 = arith.constant 0 : index
    %c0_52 = arith.constant 0 : index
    %74 = vector.load %arg9[%c0_50, %c0_51, %c0_52] : memref<9x8x128xf32, #tpu.memory_space<vmem>>, vector<1x8x128xf32>
    %75 = vector.shape_cast %74 : vector<1x8x128xf32> to vector<8x128xf32>
    %c0_53 = arith.constant 0 : index
    %c0_54 = arith.constant 0 : index
    %c0_55 = arith.constant 0 : index
    %76 = vector.load %arg5[%c0_53, %c0_54, %c0_55] : memref<9x8x1xf32, #tpu.memory_space<vmem>>, vector<1x8x1xf32>
    %77 = vector.shape_cast %76 : vector<1x8x1xf32> to vector<8x1xf32>
    %78 = vector.broadcast %77 : vector<8x1xf32> to vector<8x128xf32>
    %79 = arith.mulf %75, %78 : vector<8x128xf32>
    %c3_56 = arith.constant 3 : index
    %c0_57 = arith.constant 0 : index
    %c0_58 = arith.constant 0 : index
    %80 = vector.load %arg9[%c3_56, %c0_57, %c0_58] : memref<9x8x128xf32, #tpu.memory_space<vmem>>, vector<1x8x128xf32>
    %81 = vector.shape_cast %80 : vector<1x8x128xf32> to vector<8x128xf32>
    %c3_59 = arith.constant 3 : index
    %c0_60 = arith.constant 0 : index
    %c0_61 = arith.constant 0 : index
    %82 = vector.load %arg5[%c3_59, %c0_60, %c0_61] : memref<9x8x1xf32, #tpu.memory_space<vmem>>, vector<1x8x1xf32>
    %83 = vector.shape_cast %82 : vector<1x8x1xf32> to vector<8x1xf32>
    %84 = vector.broadcast %83 : vector<8x1xf32> to vector<8x128xf32>
    %85 = arith.mulf %81, %84 : vector<8x128xf32>
    %86 = arith.addf %79, %85 : vector<8x128xf32>
    %c6_62 = arith.constant 6 : index
    %c0_63 = arith.constant 0 : index
    %c0_64 = arith.constant 0 : index
    %87 = vector.load %arg9[%c6_62, %c0_63, %c0_64] : memref<9x8x128xf32, #tpu.memory_space<vmem>>, vector<1x8x128xf32>
    %88 = vector.shape_cast %87 : vector<1x8x128xf32> to vector<8x128xf32>
    %c6_65 = arith.constant 6 : index
    %c0_66 = arith.constant 0 : index
    %c0_67 = arith.constant 0 : index
    %89 = vector.load %arg5[%c6_65, %c0_66, %c0_67] : memref<9x8x1xf32, #tpu.memory_space<vmem>>, vector<1x8x1xf32>
    %90 = vector.shape_cast %89 : vector<1x8x1xf32> to vector<8x1xf32>
    %91 = vector.broadcast %90 : vector<8x1xf32> to vector<8x128xf32>
    %92 = arith.mulf %88, %91 : vector<8x128xf32>
    %93 = arith.addf %86, %92 : vector<8x128xf32>
    %c1_68 = arith.constant 1 : index
    %c0_69 = arith.constant 0 : index
    %c0_70 = arith.constant 0 : index
    %94 = vector.load %arg9[%c1_68, %c0_69, %c0_70] : memref<9x8x128xf32, #tpu.memory_space<vmem>>, vector<1x8x128xf32>
    %95 = vector.shape_cast %94 : vector<1x8x128xf32> to vector<8x128xf32>
    %c1_71 = arith.constant 1 : index
    %c0_72 = arith.constant 0 : index
    %c0_73 = arith.constant 0 : index
    %96 = vector.load %arg5[%c1_71, %c0_72, %c0_73] : memref<9x8x1xf32, #tpu.memory_space<vmem>>, vector<1x8x1xf32>
    %97 = vector.shape_cast %96 : vector<1x8x1xf32> to vector<8x1xf32>
    %98 = vector.broadcast %97 : vector<8x1xf32> to vector<8x128xf32>
    %99 = arith.mulf %95, %98 : vector<8x128xf32>
    %c4_74 = arith.constant 4 : index
    %c0_75 = arith.constant 0 : index
    %c0_76 = arith.constant 0 : index
    %100 = vector.load %arg9[%c4_74, %c0_75, %c0_76] : memref<9x8x128xf32, #tpu.memory_space<vmem>>, vector<1x8x128xf32>
    %101 = vector.shape_cast %100 : vector<1x8x128xf32> to vector<8x128xf32>
    %c4_77 = arith.constant 4 : index
    %c0_78 = arith.constant 0 : index
    %c0_79 = arith.constant 0 : index
    %102 = vector.load %arg5[%c4_77, %c0_78, %c0_79] : memref<9x8x1xf32, #tpu.memory_space<vmem>>, vector<1x8x1xf32>
    %103 = vector.shape_cast %102 : vector<1x8x1xf32> to vector<8x1xf32>
    %104 = vector.broadcast %103 : vector<8x1xf32> to vector<8x128xf32>
    %105 = arith.mulf %101, %104 : vector<8x128xf32>
    %106 = arith.addf %99, %105 : vector<8x128xf32>
    %c7_80 = arith.constant 7 : index
    %c0_81 = arith.constant 0 : index
    %c0_82 = arith.constant 0 : index
    %107 = vector.load %arg9[%c7_80, %c0_81, %c0_82] : memref<9x8x128xf32, #tpu.memory_space<vmem>>, vector<1x8x128xf32>
    %108 = vector.shape_cast %107 : vector<1x8x128xf32> to vector<8x128xf32>
    %c7_83 = arith.constant 7 : index
    %c0_84 = arith.constant 0 : index
    %c0_85 = arith.constant 0 : index
    %109 = vector.load %arg5[%c7_83, %c0_84, %c0_85] : memref<9x8x1xf32, #tpu.memory_space<vmem>>, vector<1x8x1xf32>
    %110 = vector.shape_cast %109 : vector<1x8x1xf32> to vector<8x1xf32>
    %111 = vector.broadcast %110 : vector<8x1xf32> to vector<8x128xf32>
    %112 = arith.mulf %108, %111 : vector<8x128xf32>
    %113 = arith.addf %106, %112 : vector<8x128xf32>
    %c2_86 = arith.constant 2 : index
    %c0_87 = arith.constant 0 : index
    %c0_88 = arith.constant 0 : index
    %114 = vector.load %arg9[%c2_86, %c0_87, %c0_88] : memref<9x8x128xf32, #tpu.memory_space<vmem>>, vector<1x8x128xf32>
    %115 = vector.shape_cast %114 : vector<1x8x128xf32> to vector<8x128xf32>
    %c2_89 = arith.constant 2 : index
    %c0_90 = arith.constant 0 : index
    %c0_91 = arith.constant 0 : index
    %116 = vector.load %arg5[%c2_89, %c0_90, %c0_91] : memref<9x8x1xf32, #tpu.memory_space<vmem>>, vector<1x8x1xf32>
    %117 = vector.shape_cast %116 : vector<1x8x1xf32> to vector<8x1xf32>
    %118 = vector.broadcast %117 : vector<8x1xf32> to vector<8x128xf32>
    %119 = arith.mulf %115, %118 : vector<8x128xf32>
    %c5_92 = arith.constant 5 : index
    %c0_93 = arith.constant 0 : index
    %c0_94 = arith.constant 0 : index
    %120 = vector.load %arg9[%c5_92, %c0_93, %c0_94] : memref<9x8x128xf32, #tpu.memory_space<vmem>>, vector<1x8x128xf32>
    %121 = vector.shape_cast %120 : vector<1x8x128xf32> to vector<8x128xf32>
    %c5_95 = arith.constant 5 : index
    %c0_96 = arith.constant 0 : index
    %c0_97 = arith.constant 0 : index
    %122 = vector.load %arg5[%c5_95, %c0_96, %c0_97] : memref<9x8x1xf32, #tpu.memory_space<vmem>>, vector<1x8x1xf32>
    %123 = vector.shape_cast %122 : vector<1x8x1xf32> to vector<8x1xf32>
    %124 = vector.broadcast %123 : vector<8x1xf32> to vector<8x128xf32>
    %125 = arith.mulf %121, %124 : vector<8x128xf32>
    %126 = arith.addf %119, %125 : vector<8x128xf32>
    %c8_98 = arith.constant 8 : index
    %c0_99 = arith.constant 0 : index
    %c0_100 = arith.constant 0 : index
    %127 = vector.load %arg9[%c8_98, %c0_99, %c0_100] : memref<9x8x128xf32, #tpu.memory_space<vmem>>, vector<1x8x128xf32>
    %128 = vector.shape_cast %127 : vector<1x8x128xf32> to vector<8x128xf32>
    %c8_101 = arith.constant 8 : index
    %c0_102 = arith.constant 0 : index
    %c0_103 = arith.constant 0 : index
    %129 = vector.load %arg5[%c8_101, %c0_102, %c0_103] : memref<9x8x1xf32, #tpu.memory_space<vmem>>, vector<1x8x1xf32>
    %130 = vector.shape_cast %129 : vector<1x8x1xf32> to vector<8x1xf32>
    %131 = vector.broadcast %130 : vector<8x1xf32> to vector<8x128xf32>
    %132 = arith.mulf %128, %131 : vector<8x128xf32>
    %133 = arith.addf %126, %132 : vector<8x128xf32>
    %134 = vector.broadcast %69 : vector<1x128xf32> to vector<8x128xf32>
    %135 = arith.mulf %134, %93 : vector<8x128xf32>
    %136 = arith.addf %113, %135 : vector<8x128xf32>
    %137 = vector.broadcast %73 : vector<1x128xf32> to vector<8x128xf32>
    %138 = arith.mulf %137, %133 : vector<8x128xf32>
    %139 = arith.addf %136, %138 : vector<8x128xf32>
    %c0_104 = arith.constant 0 : index
    %c0_105 = arith.constant 0 : index
    %c0_106 = arith.constant 0 : index
    %140 = vector.load %arg4[%c0_104, %c0_105, %c0_106] : memref<1x8x1xf32, #tpu.memory_space<vmem>>, vector<1x8x1xf32>
    %141 = vector.shape_cast %140 : vector<1x8x1xf32> to vector<8x1xf32>
    %142 = vector.broadcast %141 : vector<8x1xf32> to vector<8x128xf32>
    %143 = arith.addf %139, %142 : vector<8x128xf32>
    %cst_107 = arith.constant 1.000000e+00 : f32
    %144 = vector.broadcast %cst_107 : f32 to vector<1x128xf32>
    %145 = tpu.concatenate %143, %144 in 0 : vector<8x128xf32>, vector<1x128xf32> -> vector<9x128xf32>
    %146 = arith.truncf %145 : vector<9x128xf32> to vector<9x128xbf16>
    %c0_108 = arith.constant 0 : index
    %c0_109 = arith.constant 0 : index
    %147 = vector.load %arg6[%c0_108, %c0_109] : memref<72x9xbf16, #tpu.memory_space<vmem>>, vector<72x9xbf16>
    %cst_110 = arith.constant dense<0.000000e+00> : vector<72x128xf32>
    %148 = tpu.matmul %147, %146, %cst_110 {dimension_numbers = #tpu.dot_dimension_numbers<[1], [0], [0], [1], [0, 0, 1, 1], [], []>} : vector<72x9xbf16>, vector<9x128xbf16>, vector<72x128xf32> -> vector<72x128xf32>
    %c0_111 = arith.constant 0 : index
    %c0_112 = arith.constant 0 : index
    %c0_113 = arith.constant 0 : index
    %149 = vector.load %arg9[%c0_111, %c0_112, %c0_113] : memref<9x8x128xf32, #tpu.memory_space<vmem>>, vector<1x8x128xf32>
    %150 = vector.shape_cast %149 : vector<1x8x128xf32> to vector<8x128xf32>
    %151 = vector.extract_strided_slice %148 {offsets = [0, 0], sizes = [8, 128], strides = [1, 1]} : vector<72x128xf32> to vector<8x128xf32>
    %152 = arith.mulf %150, %151 : vector<8x128xf32>
    %c3_114 = arith.constant 3 : index
    %c0_115 = arith.constant 0 : index
    %c0_116 = arith.constant 0 : index
    %153 = vector.load %arg9[%c3_114, %c0_115, %c0_116] : memref<9x8x128xf32, #tpu.memory_space<vmem>>, vector<1x8x128xf32>
    %154 = vector.shape_cast %153 : vector<1x8x128xf32> to vector<8x128xf32>
    %155 = vector.extract_strided_slice %148 {offsets = [24, 0], sizes = [8, 128], strides = [1, 1]} : vector<72x128xf32> to vector<8x128xf32>
    %156 = arith.mulf %154, %155 : vector<8x128xf32>
    %157 = arith.addf %152, %156 : vector<8x128xf32>
    %c6_117 = arith.constant 6 : index
    %c0_118 = arith.constant 0 : index
    %c0_119 = arith.constant 0 : index
    %158 = vector.load %arg9[%c6_117, %c0_118, %c0_119] : memref<9x8x128xf32, #tpu.memory_space<vmem>>, vector<1x8x128xf32>
    %159 = vector.shape_cast %158 : vector<1x8x128xf32> to vector<8x128xf32>
    %160 = vector.extract_strided_slice %148 {offsets = [48, 0], sizes = [8, 128], strides = [1, 1]} : vector<72x128xf32> to vector<8x128xf32>
    %161 = arith.mulf %159, %160 : vector<8x128xf32>
    %162 = arith.addf %157, %161 : vector<8x128xf32>
    %c1_120 = arith.constant 1 : index
    %c0_121 = arith.constant 0 : index
    %c0_122 = arith.constant 0 : index
    %163 = vector.load %arg9[%c1_120, %c0_121, %c0_122] : memref<9x8x128xf32, #tpu.memory_space<vmem>>, vector<1x8x128xf32>
    %164 = vector.shape_cast %163 : vector<1x8x128xf32> to vector<8x128xf32>
    %165 = vector.extract_strided_slice %148 {offsets = [8, 0], sizes = [8, 128], strides = [1, 1]} : vector<72x128xf32> to vector<8x128xf32>
    %166 = arith.mulf %164, %165 : vector<8x128xf32>
    %c4_123 = arith.constant 4 : index
    %c0_124 = arith.constant 0 : index
    %c0_125 = arith.constant 0 : index
    %167 = vector.load %arg9[%c4_123, %c0_124, %c0_125] : memref<9x8x128xf32, #tpu.memory_space<vmem>>, vector<1x8x128xf32>
    %168 = vector.shape_cast %167 : vector<1x8x128xf32> to vector<8x128xf32>
    %169 = vector.extract_strided_slice %148 {offsets = [32, 0], sizes = [8, 128], strides = [1, 1]} : vector<72x128xf32> to vector<8x128xf32>
    %170 = arith.mulf %168, %169 : vector<8x128xf32>
    %171 = arith.addf %166, %170 : vector<8x128xf32>
    %c7_126 = arith.constant 7 : index
    %c0_127 = arith.constant 0 : index
    %c0_128 = arith.constant 0 : index
    %172 = vector.load %arg9[%c7_126, %c0_127, %c0_128] : memref<9x8x128xf32, #tpu.memory_space<vmem>>, vector<1x8x128xf32>
    %173 = vector.shape_cast %172 : vector<1x8x128xf32> to vector<8x128xf32>
    %174 = vector.extract_strided_slice %148 {offsets = [56, 0], sizes = [8, 128], strides = [1, 1]} : vector<72x128xf32> to vector<8x128xf32>
    %175 = arith.mulf %173, %174 : vector<8x128xf32>
    %176 = arith.addf %171, %175 : vector<8x128xf32>
    %c2_129 = arith.constant 2 : index
    %c0_130 = arith.constant 0 : index
    %c0_131 = arith.constant 0 : index
    %177 = vector.load %arg9[%c2_129, %c0_130, %c0_131] : memref<9x8x128xf32, #tpu.memory_space<vmem>>, vector<1x8x128xf32>
    %178 = vector.shape_cast %177 : vector<1x8x128xf32> to vector<8x128xf32>
    %179 = vector.extract_strided_slice %148 {offsets = [16, 0], sizes = [8, 128], strides = [1, 1]} : vector<72x128xf32> to vector<8x128xf32>
    %180 = arith.mulf %178, %179 : vector<8x128xf32>
    %c5_132 = arith.constant 5 : index
    %c0_133 = arith.constant 0 : index
    %c0_134 = arith.constant 0 : index
    %181 = vector.load %arg9[%c5_132, %c0_133, %c0_134] : memref<9x8x128xf32, #tpu.memory_space<vmem>>, vector<1x8x128xf32>
    %182 = vector.shape_cast %181 : vector<1x8x128xf32> to vector<8x128xf32>
    %183 = vector.extract_strided_slice %148 {offsets = [40, 0], sizes = [8, 128], strides = [1, 1]} : vector<72x128xf32> to vector<8x128xf32>
    %184 = arith.mulf %182, %183 : vector<8x128xf32>
    %185 = arith.addf %180, %184 : vector<8x128xf32>
    %c8_135 = arith.constant 8 : index
    %c0_136 = arith.constant 0 : index
    %c0_137 = arith.constant 0 : index
    %186 = vector.load %arg9[%c8_135, %c0_136, %c0_137] : memref<9x8x128xf32, #tpu.memory_space<vmem>>, vector<1x8x128xf32>
    %187 = vector.shape_cast %186 : vector<1x8x128xf32> to vector<8x128xf32>
    %188 = vector.extract_strided_slice %148 {offsets = [64, 0], sizes = [8, 128], strides = [1, 1]} : vector<72x128xf32> to vector<8x128xf32>
    %189 = arith.mulf %187, %188 : vector<8x128xf32>
    %190 = arith.addf %185, %189 : vector<8x128xf32>
    %191 = vector.broadcast %69 : vector<1x128xf32> to vector<8x128xf32>
    %192 = arith.mulf %191, %162 : vector<8x128xf32>
    %193 = arith.addf %176, %192 : vector<8x128xf32>
    %194 = vector.broadcast %73 : vector<1x128xf32> to vector<8x128xf32>
    %195 = arith.mulf %194, %190 : vector<8x128xf32>
    %196 = arith.addf %193, %195 : vector<8x128xf32>
    %c0_138 = arith.constant 0 : index
    %c0_139 = arith.constant 0 : index
    %c0_140 = arith.constant 0 : index
    %197 = vector.load %arg7[%c0_138, %c0_139, %c0_140] : memref<1x8x128xf32, #tpu.memory_space<vmem>>, vector<1x8x128xf32>
    %198 = vector.shape_cast %197 : vector<1x8x128xf32> to vector<8x128xf32>
    %199 = vector.shape_cast %196 : vector<8x128xf32> to vector<1x8x128xf32>
    tpu.vector_store %arg7[%c0_138, %c0_139, %c0_140], %199 {strides = array<i32>} : memref<1x8x128xf32, #tpu.memory_space<vmem>>, vector<1x8x128xf32>,
    return
  }
  func.func @transform_0(%arg0: i32, %arg1: i32) -> (i32, i32, i32) {
    %c0_i32 = arith.constant 0 : i32
    %c0_i32_0 = arith.constant 0 : i32
    return %arg0, %c0_i32, %arg1 : i32, i32, i32
  }
  func.func @transform_1(%arg0: i32, %arg1: i32) -> (i32, i32, i32, i32) {
    %c0_i32 = arith.constant 0 : i32
    %c0_i32_0 = arith.constant 0 : i32
    %c0_i32_1 = arith.constant 0 : i32
    return %arg0, %arg1, %c0_i32, %c0_i32_0 : i32, i32, i32, i32
  }
  func.func @transform_2(%arg0: i32, %arg1: i32) -> (i32, i32, i32) {
    %c0_i32 = arith.constant 0 : i32
    %c0_i32_0 = arith.constant 0 : i32
    %c0_i32_1 = arith.constant 0 : i32
    return %arg0, %c0_i32, %c0_i32_0 : i32, i32, i32
  }
  func.func @transform_3(%arg0: i32, %arg1: i32) -> (i32, i32, i32) {
    %c0_i32 = arith.constant 0 : i32
    %c0_i32_0 = arith.constant 0 : i32
    %c0_i32_1 = arith.constant 0 : i32
    %c0_i32_2 = arith.constant 0 : i32
    return %c0_i32, %c0_i32_0, %c0_i32_1 : i32, i32, i32
  }
  func.func @transform_4(%arg0: i32, %arg1: i32) -> (i32, i32) {
    %c0_i32 = arith.constant 0 : i32
    %c0_i32_0 = arith.constant 0 : i32
    %c0_i32_1 = arith.constant 0 : i32
    return %c0_i32, %c0_i32_0 : i32, i32
  }
  func.func @transform_5(%arg0: i32, %arg1: i32) -> (i32, i32, i32) {
    %c0_i32 = arith.constant 0 : i32
    %c0_i32_0 = arith.constant 0 : i32
    return %arg0, %c0_i32, %arg1 : i32, i32, i32
  }
}

</mosaic_0001>

<bundles_post_ra>
// kernel: tpu_custom_call.1
= control target key start
LH: loop header
LB: loop body
LE: loop exit
PB: predicated region body
PF: predicated region fallthrough
CT: control target
= control target key end

     0   :  { %10 = vsyncpa [#allocation5], 0  ;;  %s1295_s0 = inlined_call_operand.vmem [shape: f32[2,8,256], index: 0, kind: input, shape index: {}]   ;;  %s1296_s1 = inlined_call_operand.vmem [shape: f32[2,2,8,32], index: 1, kind: input, shape index: {}]   ;;  %s1297_s2 = inlined_call_operand.vmem [shape: f32[2,8,1], index: 2, kind: input, shape index: {}]   ;;  %s1298_s3 = inlined_call_operand.vmem [shape: f32[9,8,1], index: 3, kind: input, shape index: {}]   ;;  %s1299_s4 = inlined_call_operand.vmem [shape: bf16[72,9], index: 4, kind: input, shape index: {}]   ;;  %s1300_s5 = inlined_call_operand.hbm [shape: f32[2,8,256], index: 5, kind: output, shape index: {}]  }
   0x1   :  { %12 = vsyncpa [#allocation5 + $0x1], 0  ;;  %s1049_s18 = smov 0   ;;  %s1051_s19 = smov 0  }
   0x2   :  { %s1053_s20 = smov 0   ;;  %s1055_s21 = smov 0  }
   0x3   :  { %s1057_s22 = smov 0   ;;  %s1059_s23 = smov 0  }
   0x4   :  { %s1061_s24 = smov 0   ;;  %s1063_s25 = smov 0  }
   0x5 LB: > { %s773_s26 = sadd.s32 4294967295, %s1006_s25   ;;  %s774_s27 = sadd.s32 4294967294, %s1006_s25   ;;  %s1006_s25 = sphi %s1063_s25, %s18_s25   ;;  %s1002_s24 = sphi %s1061_s24, %s1320_s24   ;;  %s998_s23 = sphi %s1059_s23, %s1319_s23   ;;  %s994_s22 = sphi %s1057_s22, %s1318_s22   ;;  %s990_s21 = sphi %s1055_s21, %s1317_s21   ;;  %s986_s20 = sphi %s1053_s20, %s1316_s20   ;;  %s982_s19 = sphi %s1051_s19, %s1315_s19   ;;  %s978_s18 = sphi %s1049_s18, %s1314_s18  }
   0x6   : > { %s27_s28 = sadd.s32 1, %s998_s23  ;;  %s30_s29 = sadd.s32 1, %s1002_s24 }
   0x7   : > { %p28_p0 = scmp.ge.s32.totalorder %s27_s28, 2  ;;  %p173_p1 = scmp.ne.s32.totalorder %s986_s20, %s982_s19 }
   0x8   : > { %p174_p2 = scmp.eq.s32.totalorder %s773_s26, 3  ;;  %p179_p5 = scmp.ne.s32.totalorder %s982_s19, %s978_s18 }
   0x9   : > { %s1322_s28 = smov (%p28_p0, %s27_s28), 0  ;;  %s1324_s29 = smov (!%p28_p0, %s30_s29), %s1002_s24 }
   0xa   : > { %s159_s30 = ssub.s32 %s998_s23, %s1322_s28  ;;  %p1100_p3 = por %p174_p2, %p173_p1 }
   0xb   : > { %p32_p4 = scmp.ge.s32.totalorder %s1324_s29, 2  ;;  %p180_p6 = scmp.eq.s32.totalorder %s774_s27, 3 }
   0xc   : > { %p777_p7 = scmp.ge.s32.totalorder %s1006_s25, 1  ;;  %p233_p9 = scmp.lt.s32.totalorder %s1006_s25, 5 }
   0xd   : > { %s1326_s29 = smov (%p32_p4, %s1324_s29), 0  ;;  %p1109_p8 = por %p180_p6, %p179_p5 }
   0xe   : > { %1307 = sst [smem:[#allocation7_spill]] %s1326_s29  ;;  %s158_s8 = ssub.s32 %s1002_s24, %s1326_s29 }
   0xf   : > { %s163_s9 = sadd.s32 1, %s986_s20  ;;  %s160_s10 = sor.u32 %s159_s30, %s158_s8 }
  0x10   : > { %p234_p10 = pnand %p777_p7, %p233_p9  ;;  %p161_p11 = scmp.eq.s32.totalorder %s160_s10, 0 }
  0x11   : > { %p276_p12 = scmp.lt.s32.totalorder (!%p234_p10), %s994_s22, 1  ;;  %p278_p13 = scmp.lt.s32.totalorder (!%p234_p10), %s990_s21, 1 }
  0x12   : > { %s1118_s11 = scalar_select %p161_p11, %s986_s20, %s163_s9  }
  0x13   : > { %237 = sbr.rel (%p234_p10) target bundleno = 471 (0x1d7), region = 40  ;;  %s1305_s13 = smov (!%p234_p10), 112  }
  0x14   : > { %s1010_s29 = smov (!%p234_p10), 17   ;;  %s1302_s27 = smov (!%p234_p10), 127  }
  0x15   : > { %s1303_s9 = smov (!%p234_p10), 15   ;;  %s1304_s10 = smov (!%p234_p10), 113  }
  0x18   : > { %v786_v0 = vld [vmem:[%s1298_s3 + $0x18] sm:$0xff]  ;;  %v1008_v1 = vmov 0   ;;  %s1126_s14 = scalar_select %p276_p12, %s994_s22, 1  ;;  %v442_v4 = vld [vmem:[%s1298_s3] sm:$0xff]  ;;  %v787_v6 = vld [vmem:[%s1298_s3 + $0x30] sm:$0xff]  ;;  %vm297_vm0 = vcmask 916480   ;;  %v421_v37 = vlaneseq }
  0x19   : > { %910 = vset.pattern.permute.xlu1 %v1008_v1  ;;  %909 = vset.pattern.permute.xlu0 %v1008_v1  ;;  %s279_s15 = scalar_select %p278_p13, %s990_s21, 1  ;;  %v789_v5 = vld [vmem:[%s1298_s3 + $0x20] sm:$0xff]  ;;  %v1016_v7 = vmov 0.0   ;;  %v788_v8 = vld [vmem:[%s1298_s3 + $0x8] sm:$0xff]  ;;  %v791_v9 = vld [vmem:[%s1298_s3 + $0x10] sm:$0xff]  ;;  %vm299_vm1 = vcmask 1047680  }
  0x1a   : > { %454 = vperm.xlu1 %910, %v786_v0   ;;  %911 = vset.pattern.permute.xlu2 %v1008_v1  ;;  %s779_s16 = sshll.u32 %s1126_s14, 1  ;;  %298 = vst.msk [vmem:[#allocation2] sm:$0xff] %vm297_vm0, %v1016_v7  ;;  %v792_v10 = vld [vmem:[%s1298_s3 + $0x28] sm:$0xff]  ;;  %v793_v11 = vld [vmem:[%s1298_s3 + $0x40] sm:$0xff]  ;;  %vm306_vm2 = vcmask 1048448   ;;  %vm315_vm3 = vcmask 130048  }
  0x1b   : > { %s281_s17 = sadd.s32 %s779_s16, %s279_s15  ;;  %s1011_s15 = smov 1   ;;  %300 = vst.msk [vmem:[#allocation2 + $0x10] sm:$0xff] %vm299_vm1, %v1016_v7  ;;  %v790_v17 = vld [vmem:[%s1298_s3 + $0x38] sm:$0xff]  ;;  %vm325_vm4 = vcmask 138240   ;;  %vm362_vm5 = vcmask 7168   ;;  %v422_v38 = vand.u32 127, %v421_v37 }
  0x1c   : > { %s780_s26 = sshll.u32 %s281_s17, 3  ;;  %s1012_s16 = smov 16   ;;  %vm391_vm6 = vcmask 924672   ;;  %vm378_vm7 = vcmask 1039360   ;;  %vm349_vm8 = vcmask 121856   ;;  %vm416_vm10 = vcmask 908288  }
  0x1d   : > { %s291_s8 = scalar_lea.vmem %s1296_s1, %s780_s26  ;;  %s283_s12 = scalar_lea.vmem %s1295_s0, %s780_s26  ;;  %v427_v46 = vand.u32 15, %v422_v38  ;;  %vm587_vm12 = vcmask 1043456   ;;  %vm588_vm13 = vcmask 1044480   ;;  %vm571_vm14 = vcmask 72704  }
  0x1e   : > { %v301_v2 = vld [vmem:[%s291_s8] sm:$0xff] }
  0x1f   : > { %v1136_v3 = vld [vmem:[%s283_s12] sm:$0xff]  ;;  %303 = vrot.lane.b32.xlu0 %v301_v2, %s1305_s13  ;;  %s1311_s12 = smov 127   ;;  %vm435_vm9 = vcmp.ge.s32.totalorder %v427_v46, 1  ;;  %vm438_vm11 = vcmp.lt.s32.totalorder %v427_v46, 15 }
  0x20   : > { %360 = vrot.lane.b32.xlu2 %v1136_v3, %s1011_s15  ;;  %v1218_v61 = vsel %vm435_vm9, 1.0, %v1016_v7 }
  0x22   : > { %323 = vrot.lane.b32.xlu1 %v1136_v3, %s1010_s29 }
  0x27   : > { %312 = vrot.lane.b32.xlu0 %v301_v2, %s1305_s13 }
  0x28   : > { %464 = vperm.xlu2 %911, %v787_v6   ;;  %v1222_v6 = vsel %vm438_vm11, 1.0, %v1016_v7 }
  0x2a   : > { %335 = vrot.lane.b32.xlu1 %v1136_v3, %s1012_s16 }
  0x2f   : > { %445 = vperm.xlu0 %909, %v442_v4  }
  0x30   : > { %503 = vperm.xlu2 %911, %v791_v9  }
  0x32   : > { %374 = vrot.lane.b32.xlu1 %v1136_v3, %s1302_s27  ;;  %s783_s27 = sshll.u32 %s1126_s14, 3 }
  0x33   : > { %s295_s8 = scalar_lea.vmem %s1297_s2, %s783_s27 }
  0x34   : > { %v531_v16 = vld [vmem:[%s295_s8] sm:$0xff] }
  0x37   : > { %347 = vrot.lane.b32.xlu0 %v1136_v3, %s1303_s9  ;;  %s1017_s9 = smov 111  }
  0x3a   : > { %483 = vperm.xlu1 %910, %v789_v5  }
  0x3f   : > { %387 = vrot.lane.b32.xlu0 %v1136_v3, %s1304_s10  ;;  %s1310_s10 = smov 15  }
  0x42   : > { %400 = vrot.lane.b32.xlu1 %v1136_v3, %s1305_s13  ;;  %s1309_s13 = smov 113  }
  0x47   : > { %474 = vperm.xlu0 %909, %v788_v8  }
  0x4f   : > { %512 = vperm.xlu0 %909, %v792_v10  }
  0x57   : > { %412 = vrot.lane.b32.xlu0 %v1136_v3, %s1017_s9 }
  0x5f   : > { %522 = vperm.xlu0 %909, %v793_v11  }
  0x7a   : > { %v361_v19 = vpop.permute.xlu2 %360 }
  0x82   : > { %v465_v22 = vpop.permute.xlu2 %464 }
  0x8a   : > { %v504_v25 = vpop.permute.xlu2 %503 }
  0x8c   : > { %v455_v18 = vpop.permute.xlu1 %454 }
  0x91   : > { %v304_v12 = vpop.permute.xlu0 %303 }
  0x92   : > { %307 = vst.msk [vmem:[#allocation2] sm:$0xff] %vm306_vm2, %v304_v12 }
  0x94   : > { %v324_v20 = vpop.permute.xlu1 %323 }
  0x99   : > { %v313_v13 = vpop.permute.xlu0 %312  ;;  %v354_v14 = vld [vmem:[#allocation2] sm:$0xff] }
  0x9a   : > { %316 = vst.msk [vmem:[#allocation2 + $0x10] sm:$0xff] %vm315_vm3, %v313_v13  ;;  %358 = vrot.lane.b32.xlu2 %v354_v14, %s1011_s15  ;;  %321 = vrot.lane.b32.xlu1 %v354_v14, %s1010_s29  ;;  %s1312_s15 = smov 112   ;;  %v1018_v13 = vmov 65535   ;;  %s273_s29 = sand.u32 1, %s982_s19  }
  0x9b   : > { %s778_s14 = sshll.u32 %s273_s29, 3  ;;  %s648_s26 = scalar_lea.sflag [#allocation5], %s273_s29 }
  0x9c   : > { %v336_v23 = vpop.permute.xlu1 %335 }
  0xa1   : > { %v384_v15 = vld [vmem:[#allocation2 + $0x10] sm:$0xff]  ;;  %v446_v21 = vpop.permute.xlu0 %445 }
  0xa2   : > { %333 = vrot.lane.b32.xlu2 %v354_v14, %s1012_s16  ;;  %389 = vrot.lane.b32.xlu1 %v384_v15, %s1309_s13 }
  0xa4   : > { %v375_v26 = vpop.permute.xlu1 %374 }
  0xa9   : > { %v348_v24 = vpop.permute.xlu0 %347 }
  0xaa   : > { %345 = vrot.lane.b32.xlu2 %v354_v14, %s1310_s10  ;;  %414 = vrot.lane.b32.xlu1 %v384_v15, %s1017_s9  ;;  %v589_v14 = vsel %vm587_vm12, 4294967295, %v1018_v13 }
  0xac   : > { %v484_v29 = vpop.permute.xlu1 %483 }
  0xad   : > { %v486_v55 = vmul.f32 %v484_v29, %v1136_v3 }
  0xb1   : > { %v388_v28 = vpop.permute.xlu0 %387 }
  0xb2   : > { %376 = vrot.lane.b32.xlu2 %v384_v15, %s1311_s12  ;;  %534 = vperm.xlu1 %910, %v531_v16   ;;  %v547_v16 = vld [vmem:[%s1299_s4 + $0x20] sm:$0xf] }
  0xb4   : > { %v401_v32 = vpop.permute.xlu1 %400 }
  0xb9   : > { %v475_v31 = vpop.permute.xlu0 %474 }
  0xba   : > { %402 = vrot.lane.b32.xlu2 %v384_v15, %s1312_s15  ;;  %s816_s15 = sshll.u32 %s994_s22, 1 }
  0xbb   : > { %s658_s17 = sadd.s32 %s990_s21, %s816_s15  ;;  %s275_s21 = scalar_lea.vmem [#allocation4], %s778_s14 }
  0xbc   : > { %s817_s16 = sshll.u32 %s658_s17, 3  ;;  %s662_s27 = sshll.u32 %s275_s21, 4  ;;  %s663_s27 = int_to_ptr.vmem [resolvable:$true] %s662_s27 }
  0xbd   : > { %s660_s13 = scalar_lea.hbm %s1300_s5, %s817_s16  ;;  %s932_s17 = scalar_lea.hbm %s1300_s5, 32 }
  0xbe   : > { %s664_s10 = sshll.u32 %s660_s13, 4  ;;  %s665_s10 = int_to_ptr.hbm [resolvable:$true] %s664_s10 }
  0xbf   : > { %s926_s30 = sshra.s32 %s665_s10, 4  ;;  %s927_s30 = int_to_ptr.hbm [resolvable:$true] %s926_s30 }
  0xc0   : > { %s928_s8 = scalar_lea.hbm %s927_s30, 8  ;;  %p933_p4 = scmp.lt.s32.totalorder %s927_s30, %s1300_s5 }
  0xc1   : > { %v513_v34 = vpop.permute.xlu0 %512  ;;  %p929_p0 = scmp.ne.s32.totalorder %s927_s30, %s928_s8  ;;  %p934_p5 = scmp.lt.s32.totalorder %s932_s17, %s928_s8 }
  0xc2   : > { %493 = vperm.xlu2 %911, %v790_v17  }
  0xc3   : > { %p930_p1 = pnand %p929_p0, %p1100_p3  ;;  %p935_p6 = por %p934_p5, %p933_p4 }
  0xc5   : > { %p931_p2 = pneg %p930_p1 }
  0xc7   : > { %p936_p7 = pnand %p935_p6, %p931_p2 }
  0xc9   : > { %v413_v40 = vpop.permute.xlu0 %412 }
  0xd1   : > { %v523_v62 = vpop.permute.xlu0 %522 }
  0xf4   : > { %v359_v27 = vpop.permute.xlu2 %358 }
  0xf5   : > { %v1196_v41 = vsel %vm362_vm5, %v359_v27, %v361_v19  ;;  %v565_v19 = vunpack.c.l.b16 %v547_v16 }
  0xf6   : > { %v457_v48 = vmul.f32 %v455_v18, %v1196_v41  ;;  %v590_v18 = vsel %vm588_vm13, %v589_v14, 0 }
  0xfc   : > { %v334_v30 = vpop.permute.xlu2 %333 }
  0xfd   : > { %v1202_v47 = vsel %vm315_vm3, %v334_v30, %v336_v23  ;;  %v822_v23 = vld [vmem:[%s1299_s4 + $0x10] sm:$0xff] }
  0xfe   : > { %v477_v51 = vmul.f32 %v475_v31, %v1202_v47 }
 0x100   : > { %v487_v63 = vadd.f32 %v486_v55, %v477_v51 }
 0x104   : > { %v346_v33 = vpop.permute.xlu2 %345 }
 0x105   : > { %v1209_v52 = vsel %vm349_vm8, %v346_v33, %v348_v24  ;;  %v570_v24 = vpack.c.b16 %v565_v19, %v565_v19 }
 0x106   : > { %v506_v57 = vmul.f32 %v504_v25, %v1209_v52  ;;  %v823_v25 = vld [vmem:[%s1299_s4 + $0x18] sm:$0xff] }
 0x10c   : > { %v377_v35 = vpop.permute.xlu2 %376  ;;  %v322_v36 = vpop.permute.xlu1 %321 }
 0x10d   : > { %v1194_v39 = vsel %vm325_vm4, %v322_v36, %v324_v20  ;;  %v1205_v49 = vsel %vm378_vm7, %v375_v26, %v377_v35 }
 0x10e   : > { %v448_v44 = vmul.f32 %v446_v21, %v1194_v39  ;;  %v515_v54 = vmul.f32 %v513_v34, %v1205_v49  ;;  %v820_v21 = vld [vmem:[%s1299_s4] sm:$0xff] }
 0x110   : > { %v458_v53 = vadd.f32 %v457_v48, %v448_v44  ;;  %v516_v2 = vadd.f32 %v515_v54, %v506_v57 }
 0x114   : > { %v403_v42 = vpop.permute.xlu2 %402  ;;  %v390_v43 = vpop.permute.xlu1 %389 }
 0x115   : > { %v1199_v45 = vsel %vm391_vm6, %v388_v28, %v390_v43  ;;  %v1215_v59 = vsel %vm297_vm0, %v401_v32, %v403_v42 }
 0x116   : > { %v467_v50 = vmul.f32 %v465_v22, %v1199_v45  ;;  %v821_v22 = vld [vmem:[%s1299_s4 + $0x8] sm:$0xff] }
 0x118   : > { %v468_v56 = vadd.f32 %v467_v50, %v458_v53 }
 0x11a   : > { %v527_v8 = vmul.f32 %v1218_v61, %v468_v56 }
 0x11c   : > { %v494_v58 = vpop.permute.xlu2 %493  ;;  %v415_v60 = vpop.permute.xlu1 %414 }
 0x11d   : > { %v496_v0 = vmul.f32 %v494_v58, %v1215_v59  ;;  %v417_v1 = vsel %vm416_vm10, %v413_v40, %v415_v60 }
 0x11e   : > { %v525_v4 = vmul.f32 %v523_v62, %v417_v1 }
 0x11f   : > { %v497_v5 = vadd.f32 %v496_v0, %v487_v63 }
 0x120   : > { %v526_v9 = vadd.f32 %v525_v4, %v516_v2 }
 0x121   : > { %v528_v10 = vadd.f32 %v527_v8, %v497_v5 }
 0x122   : > { %v529_v11 = vmul.f32 %v1222_v6, %v526_v9 }
 0x124   : > { %v530_v12 = vadd.f32 %v529_v11, %v528_v10  ;;  %v535_v15 = vpop.permute.xlu1 %534 }
 0x126   : > { %v537_v17 = vadd.f32 %v535_v15, %v530_v12 }
 0x128   : > { %v538_v7 = vpack.c.bf16 1.0, %v537_v17 }
 0x12a   : > { %v592_v20 = vand.u32 %v590_v18, %v538_v7 }
 0x12c   : > { %601 = vmatpush.bf16.msra.mxu0 %v592_v20  ;;  %824 = vmatpush.bf16.msra.mxu1 %v592_v20 }
 0x12d   : > { %825 = vmatpush.bf16.msra.mxu2 %v592_v20  ;;  %826 = vmatpush.bf16.msra.mxu3 %v592_v20 }
 0x12f   : > { %810 = vmatmul.msk.bf16.vlgmr.msra.gmra.mxu0 %vm571_vm14, %v820_v21  ;;  %811 = vmatmul.msk.bf16.vlgmr.msra.gmra.mxu1 %vm571_vm14, %v821_v22 }
 0x130   : > { %812 = vmatmul.msk.bf16.vlgmr.msra.gmra.mxu2 %vm571_vm14, %v822_v23  ;;  %814 = vmatmul.msk.bf16.vlgmr.msra.gmra.mxu3 %vm571_vm14, %v570_v24 }
 0x140   : > { %813 = vmatmul.msk.bf16.gmra.mxu2 %vm571_vm14, %v823_v25 }
 0x1ac   : > { %v608_v28 = vpop.f32.mrf.mxu1  ;;  %v603_v29 = vpop.f32.mrf.mxu0 }
 0x1ad   : > { %v627_v37 = vmul.f32 %v603_v29, %v1194_v39  ;;  %v637_v38 = vmul.f32 %v608_v28, %v1209_v52 }
 0x1b3   : > { %v613_v26 = vpop.f32.mrf.mxu2  ;;  %v623_v27 = vpop.f32.mrf.mxu3 }
 0x1b4   : > { %v610_v32 = vpop.f32.mrf.mxu1  ;;  %v605_v36 = vpop.f32.mrf.mxu0  ;;  %v633_v46 = vmul.f32 %v613_v26, %v1136_v3 }
 0x1b5   : > { %v628_v34 = vmul.f32 %v610_v32, %v1196_v41  ;;  %v632_v42 = vmul.f32 %v605_v36, %v1202_v47  ;;  %v640_v41 = vmul.f32 %v623_v27, %v417_v1 }
 0x1b7   : > { %v629_v43 = vadd.f32 %v628_v34, %v627_v37  ;;  %v634_v50 = vadd.f32 %v633_v46, %v632_v42 }
 0x1bb   : > { %v615_v30 = vpop.f32.mrf.mxu2  ;;  %v625_v31 = vpop.f32.mrf.mxu3 }
 0x1bc   : > { %v638_v35 = vmul.f32 %v615_v30, %v1205_v49 }
 0x1be   : > { %v639_v44 = vadd.f32 %v638_v35, %v637_v38 }
 0x1c0   : > { %v641_v51 = vadd.f32 %v640_v41, %v639_v44 }
 0x1c2   : > { %v644_v3 = vmul.f32 %v1222_v6, %v641_v51 }
 0x1c3   : > { %v618_v33 = vpop.f32.mrf.mxu2 }
 0x1c4   : > { %v630_v40 = vmul.f32 %v618_v33, %v1199_v45 }
 0x1c6   : > { %v631_v48 = vadd.f32 %v630_v40, %v629_v43 }
 0x1c8   : > { %v642_v45 = vmul.f32 %v1218_v61, %v631_v48 }
 0x1cb   : > { %v620_v49 = vpop.f32.mrf.mxu2 }
 0x1cc   : > { %v635_v39 = vmul.f32 %v620_v49, %v1215_v59 }
 0x1ce   : > { %v636_v47 = vadd.f32 %v635_v39, %v634_v50 }
 0x1d0   : > { %v643_v52 = vadd.f32 %v642_v45, %v636_v47 }
 0x1d2   : > { %v645_v53 = vadd.f32 %v644_v3, %v643_v52 }
 0x1d4   : > { %646 = vst [vmem:[%s275_s21] sm:$0xff] %v645_v53 }
 0x1d5   : > { %939 = shalt.err (!%p936_p7)
}
 0x1d6   : > { %827 = dma.vmem_to_hbm [thread:$0]  (%p1100_p3), %s663_s27, 128, %s665_s10, %s648_s26  }
 0x1d7 PF: > { %p833_p9 = scmp.ge.s32.totalorder %s1006_s25, 2  ;;  %s676_s29 = sand.u32 1, %s978_s18  }
 0x1d8   : > { %s677_s22 = scalar_lea.sflag [#allocation5], %s676_s29 }
 0x1d9   : > { %p830_p10 = pnand %p833_p9, %p1109_p8 }
 0x1db   : > { %p831_p11 = pneg %p830_p10 }
 0x1dd   : > { %973 = dma.done.wait (%p831_p11), %s677_s22, 128  }
 0x1de   : > { %975 = vsyncadd (%p831_p11), %s677_s22, 4294967168  ;;  %s18_s25 = sadd.s32 1, %s1006_s25   ;;  %s1313_s6 = sld [smem:[#allocation7_spill]] }
 0x1df   : > { %p15_p12 = scmp.ge.s32.totalorder %s18_s25, 6   ;;  %s1314_s18 = smov %s982_s19 }
 0x1e0   : > { %s1315_s19 = smov %s986_s20  ;;  %s1316_s20 = smov %s1118_s11 }
 0x1e1   : > { %s1317_s21 = smov %s998_s23  ;;  %s1318_s22 = smov %s1002_s24 }
 0x1e2   : > { %s1319_s23 = smov %s1322_s28  ;;  %17 = sbr.rel (!%p15_p12) target bundleno = 5 (0x5), region = 97 }
 0x1e4   : > { %s1320_s24 = smov %s1313_s6 }
 0x1e7   :  { %683 = vsyncpa [#allocation5], 1 }
 0x1e8   :  { %685 = vsyncpa [#allocation5 + $0x1], 1 }

</bundles_post_ra>
